<compile_context>
chip_gen: v5e
topology: v5e:2x2
jax: 0.10.0
libtpu: 0.0.40
codegen_flags: <defaults>
</compile_context>

<pallas_src>
import functools

import jax
import jax.numpy as jnp
from jax.experimental import pallas as pl
from jax.experimental.pallas import tpu as pltpu

# ---- model hyper-parameters (small, TPU-friendly) ---------------------------
NUM_LAYERS = 3      # dilations 1, 2, 4
NUM_F_MAPS = 32
DIM        = 16
CLASSES    = 8
BATCH      = 2
SEQ_T      = 64     # B * T = 128 -> one full lane group


def _ssm_kernel(x_ref, m_ref, w_ref, b_ref, o_ref,
                *, seq_t, num_layers, dim, f_maps, classes):
    """Whole batch at once: (D, B*T) -> (CLASSES, B*T).

    w_ref: (F*(1+2L) + C, 3F) packed weight slab, rows:
        [0:F)                 w_in        (cols 0:D)
        [F + i*F : F+(i+1)*F) wd_fused[i] (cols 0:3F)      i in [0, L)
        [F+L*F + i*F : ...)   w1[i]       (cols 0:F)
        [F+2*L*F : +C)        w_out       (cols 0:F)
    b_ref: (F, 2L+2) packed bias slab, columns:
        0: b_in, 1..L: bd[i], L+1..2L: b1[i], 2L+1: b_out (first C rows valid)
    """
    F, D, C, L = f_maps, dim, classes, num_layers

    x = x_ref[...]                      # (D, BT)
    m = m_ref[...]                      # (1, BT)   == mask[:, 0:1, :] flattened

    # conv_1x1 (dim -> num_f_maps): pure matmul + bias
    w_in = w_ref[0:F, 0:D]
    b_in = b_ref[:, 0:1]
    out = jnp.dot(w_in, x, preferred_element_type=jnp.float32) + b_in

    BT = out.shape[1]
    # within-batch time index, hoisted out of the layer loop and reused
    t_idx = jax.lax.broadcasted_iota(jnp.int32, out.shape, 1) % seq_t

    # Dilated residual layers (statically unrolled; dilation = 2**i)
    for i in range(L):
        d = 2 ** i
        wd_i = w_ref[F + i * F: F + (i + 1) * F, 0:3 * F]           # (F, 3F)
        w1_i = w_ref[F + L * F + i * F: F + L * F + (i + 1) * F, 0:F]
        bd_i = b_ref[:, 1 + i: 2 + i]                               # (F, 1)
        b1_i = b_ref[:, 1 + L + i: 2 + L + i]                       # (F, 1)

        left_ok = t_idx >= d            # zero-pad left edge / batch boundary
        right_ok = t_idx < seq_t - d    # zero-pad right edge / batch boundary

        # x[t - d]: rotate right by d, mask lanes that wrapped
        left = jnp.where(left_ok, pltpu.roll(out, shift=d, axis=1), 0.0)
        # x[t + d]: rotate left by d == rotate right by BT - d (non-negative)
        right = jnp.where(right_ok, pltpu.roll(out, shift=BT - d, axis=1), 0.0)

        # Fused 3-tap dilated conv: single K = 3F matmul on the MXU.
        stacked = jnp.concatenate([left, out, right], axis=0)       # (3F, BT)
        h = jnp.dot(wd_i, stacked, preferred_element_type=jnp.float32) + bd_i
        h = jnp.maximum(h, 0.0)                                     # ReLU
        h = jnp.dot(w1_i, h, preferred_element_type=jnp.float32) + b1_i
        # TODO(synk): nn.Dropout(0.5) is identity at inference; train-mode dropout not modeled.
        out = (out + h) * m                                         # residual + mask

    # conv_out (num_f_maps -> classes) + final mask
    w_out = w_ref[F + 2 * L * F: F + 2 * L * F + C, 0:F]            # (C, F)
    b_out = b_ref[0:C, 1 + 2 * L: 2 + 2 * L]                        # (C, 1)
    y = jnp.dot(w_out, out, preferred_element_type=jnp.float32) + b_out
    o_ref[...] = (y * m).astype(o_ref.dtype)


def _pack_params(params):
    """Pack all weights into one row-stacked slab and biases into one slab."""
    F, D = params["w_in"].shape
    C = params["w_out"].shape[0]
    L = params["wd"].shape[0]
    K3 = 3 * F

    def padc(w):  # pad columns to 3F
        return jnp.pad(w, ((0, 0), (0, K3 - w.shape[1])))

    # Fuse the 3 dilation taps on the contraction axis:
    # (L, 3, F, F) [layer, tap, Cout, Cin] -> (L, Cout, 3*Cin), tap-major.
    wdf = jnp.transpose(params["wd"], (0, 2, 1, 3)).reshape(L, F, K3)

    w_slab = jnp.concatenate(
        [padc(params["w_in"])]
        + [wdf[i] for i in range(L)]
        + [padc(params["w1"][i]) for i in range(L)]
        + [padc(params["w_out"])],
        axis=0)                                       # (F*(1+2L)+C, 3F)

    b_out_p = jnp.pad(params["b_out"], ((0, F - C), (0, 0)))
    b_slab = jnp.concatenate(
        [params["b_in"]]
        + [params["bd"][i] for i in range(L)]
        + [params["b1"][i] for i in range(L)]
        + [b_out_p],
        axis=1)                                       # (F, 2L+2)
    return w_slab, b_slab


def single_stage_forward(x, mask, params):
    """x: (B, DIM, T) f32;  mask: (B, CLASSES, T) f32 -> (B, CLASSES, T) f32."""
    B, D, T = x.shape
    F = params["w_in"].shape[0]
    C = params["w_out"].shape[0]
    L = params["wd"].shape[0]
    BT = B * T

    # Fold batch into the lane (time) axis: (B, D, T) -> (D, B*T).
    x2 = jnp.transpose(x, (1, 0, 2)).reshape(D, BT)
    m2 = jnp.transpose(mask[:, 0:1, :], (1, 0, 2)).reshape(1, BT)
    w_slab, b_slab = _pack_params(params)

    def spec(shape):
        return pl.BlockSpec(shape, lambda *_: (0,) * len(shape))

    kernel = functools.partial(_ssm_kernel, seq_t=T, num_layers=L,
                               dim=D, f_maps=F, classes=C)

    y2 = pl.pallas_call(
        kernel,
        out_shape=jax.ShapeDtypeStruct((C, BT), jnp.float32),
        grid=(1,),                      # single step: no per-block DMA churn
        in_specs=[
            spec(x2.shape),             # x (batch-folded)
            spec(m2.shape),             # mask[:,0:1,:] (batch-folded)
            spec(w_slab.shape),         # packed weight slab
            spec(b_slab.shape),         # packed bias slab
        ],
        out_specs=spec((C, BT)),
        compiler_params=pltpu.CompilerParams(
            dimension_semantics=("arbitrary",)),
    )(x2, m2, w_slab, b_slab)

    # Unfold: (C, B*T) -> (B, C, T).
    return jnp.transpose(y2.reshape(C, B, T), (1, 0, 2))


# ---- pure-JAX reference (uses lax.conv_general_dilated) ---------------------
def ref_forward(x, mask, params):
    m = mask[:, 0:1, :]

    def conv1x1(v, w, b):            # w: (Cout, Cin), b: (Cout, 1)
        return jnp.einsum("oc,bct->bot", w, v) + b[None, :, :]

    out = conv1x1(x, params["w_in"], params["b_in"])
    for i in range(NUM_LAYERS):
        d = 2 ** i
        # stored taps-first: (3, F, F) -> torch Conv1d layout (Cout, Cin, K)
        w_t = jnp.transpose(params["wd"][i], (1, 2, 0))
        h = jax.lax.conv_general_dilated(
            out, w_t, window_strides=(1,), padding=[(d, d)], rhs_dilation=(d,),
            dimension_numbers=("NCH", "OIH", "NCH"))
        h = h + params["bd"][i][None, :, :]
        h = jax.nn.relu(h)
        h = conv1x1(h, params["w1"][i], params["b1"][i])
        out = (out + h) * m
    return conv1x1(out, params["w_out"], params["b_out"]) * m


def init_params(key):
    ks = jax.random.split(key, 8)
    s = 0.1
    return {
        "w_in":  s * jax.random.normal(ks[0], (NUM_F_MAPS, DIM), jnp.float32),
        "b_in":  s * jax.random.normal(ks[1], (NUM_F_MAPS, 1), jnp.float32),
        "wd":    s * jax.random.normal(ks[2], (NUM_LAYERS, 3, NUM_F_MAPS, NUM_F_MAPS), jnp.float32),
        "bd":    s * jax.random.normal(ks[3], (NUM_LAYERS, NUM_F_MAPS, 1), jnp.float32),
        "w1":    s * jax.random.normal(ks[4], (NUM_LAYERS, NUM_F_MAPS, NUM_F_MAPS), jnp.float32),
        "b1":    s * jax.random.normal(ks[5], (NUM_LAYERS, NUM_F_MAPS, 1), jnp.float32),
        "w_out": s * jax.random.normal(ks[6], (CLASSES, NUM_F_MAPS), jnp.float32),
        "b_out": s * jax.random.normal(ks[7], (CLASSES, 1), jnp.float32),
    }


if __name__ == "__main__":
    key = jax.random.PRNGKey(0)
    k_x, k_m, k_p = jax.random.split(key, 3)

    x = jax.random.normal(k_x, (BATCH, DIM, SEQ_T), jnp.float32)
    # binary mask over time (same value broadcast across channels, like MS-TCN)
    valid = (jax.random.uniform(k_m, (BATCH, 1, SEQ_T)) > 0.2).astype(jnp.float32)
    mask = jnp.broadcast_to(valid, (BATCH, CLASSES, SEQ_T))

    params = init_params(k_p)

    y = single_stage_forward(x, mask, params)
    y = jax.block_until_ready(y)

    y_ref = ref_forward(x, mask, params)
    assert y.shape == (BATCH, CLASSES, SEQ_T)
    assert jnp.allclose(y, y_ref, rtol=1e-3, atol=1e-3), (
        float(jnp.max(jnp.abs(y - y_ref))))

    print("KERNEL_OK")
</pallas_src>

<mosaic_0001>
module attributes {stable_mosaic.version = 11 : i64} {
  func.func @_ssm_kernel(%arg0: i32, %arg1: memref<16x128xf32, #tpu.memory_space<vmem>>, %arg2: memref<1x128xf32, #tpu.memory_space<vmem>>, %arg3: memref<232x96xf32, #tpu.memory_space<vmem>>, %arg4: memref<32x8xf32, #tpu.memory_space<vmem>>, %arg5: memref<8x128xf32, #tpu.memory_space<vmem>>) attributes {dimension_semantics = [#tpu.dimension_semantics<arbitrary>], iteration_bounds = array<i64: 1>, scalar_prefetch = 0 : i64, scratch_operands = 0 : i64, tpu.core_type = #tpu.core_type<tc>, window_params = [{pipeline_mode = #tpu.pipeline_mode<synchronous>, transform_indices = @transform_0, window_bounds = array<i64: 16, 128>}, {pipeline_mode = #tpu.pipeline_mode<synchronous>, transform_indices = @transform_1, window_bounds = array<i64: 1, 128>}, {pipeline_mode = #tpu.pipeline_mode<synchronous>, transform_indices = @transform_2, window_bounds = array<i64: 232, 96>}, {pipeline_mode = #tpu.pipeline_mode<synchronous>, transform_indices = @transform_3, window_bounds = array<i64: 32, 8>}, {pipeline_mode = #tpu.pipeline_mode<synchronous>, transform_indices = @transform_4, window_bounds = array<i64: 8, 128>}]} {
    %c0 = arith.constant 0 : index
    %c0_0 = arith.constant 0 : index
    %0 = vector.load %arg1[%c0, %c0_0] : memref<16x128xf32, #tpu.memory_space<vmem>>, vector<16x128xf32>
    %c0_1 = arith.constant 0 : index
    %c0_2 = arith.constant 0 : index
    %1 = vector.load %arg2[%c0_1, %c0_2] : memref<1x128xf32, #tpu.memory_space<vmem>>, vector<1x128xf32>
    %c0_3 = arith.constant 0 : index
    %c0_4 = arith.constant 0 : index
    %2 = vector.load %arg3[%c0_3, %c0_4] : memref<232x96xf32, #tpu.memory_space<vmem>>, vector<32x16xf32>
    %c0_5 = arith.constant 0 : index
    %c0_6 = arith.constant 0 : index
    %3 = vector.load %arg4[%c0_5, %c0_6] : memref<32x8xf32, #tpu.memory_space<vmem>>, vector<32x1xf32>
    %cst = arith.constant dense<0.000000e+00> : vector<32x128xf32>
    %4 = tpu.matmul %2, %0, %cst {dimension_numbers = #tpu.dot_dimension_numbers<[1], [0], [0], [1], [0, 0, 1, 1], [], []>} : vector<32x16xf32>, vector<16x128xf32>, vector<32x128xf32> -> vector<32x128xf32>
    %5 = vector.broadcast %3 : vector<32x1xf32> to vector<32x128xf32>
    %6 = arith.addf %4, %5 : vector<32x128xf32>
    %7 = tpu.iota {dimensions = array<i32: 1>} : vector<32x128xi32>
    %c64_i32 = arith.constant 64 : i32
    %c0_i32 = arith.constant 0 : i32
    %8 = arith.cmpi eq, %c64_i32, %c0_i32 : i32
    %c1_i32 = arith.constant 1 : i32
    %9 = arith.select %8, %c1_i32, %c64_i32 : i32
    %10 = vector.broadcast %9 : i32 to vector<32x128xi32>
    %11 = arith.remsi %7, %10 : vector<32x128xi32>
    %c0_i32_7 = arith.constant 0 : i32
    %12 = vector.broadcast %c0_i32_7 : i32 to vector<32x128xi32>
    %13 = arith.cmpi ne, %11, %12 : vector<32x128xi32>
    %c0_i32_8 = arith.constant 0 : i32
    %14 = vector.broadcast %c0_i32_8 : i32 to vector<32x128xi32>
    %15 = arith.cmpi slt, %11, %14 : vector<32x128xi32>
    %c0_i32_9 = arith.constant 0 : i32
    %16 = arith.cmpi slt, %9, %c0_i32_9 : i32
    %17 = vector.broadcast %16 : i1 to vector<32x128xi1>
    %18 = vector.broadcast %17 : vector<32x128xi1> to vector<32x128xi1>
    %19 = arith.xori %15, %18 : vector<32x128xi1>
    %20 = arith.andi %19, %13 : vector<32x128xi1>
    %21 = vector.broadcast %9 : i32 to vector<32x128xi32>
    %22 = arith.addi %11, %21 : vector<32x128xi32>
    %23 = arith.select %20, %22, %11 : vector<32x128xi1>, vector<32x128xi32>
    %c32 = arith.constant 32 : index
    %c0_10 = arith.constant 0 : index
    %24 = vector.load %arg3[%c32, %c0_10] : memref<232x96xf32, #tpu.memory_space<vmem>>, vector<32x96xf32>
    %c128 = arith.constant 128 : index
    %c0_11 = arith.constant 0 : index
    %25 = vector.load %arg3[%c128, %c0_11] : memref<232x96xf32, #tpu.memory_space<vmem>>, vector<32x32xf32>
    %c0_12 = arith.constant 0 : index
    %c1 = arith.constant 1 : index
    %26 = vector.load %arg4[%c0_12, %c1] : memref<32x8xf32, #tpu.memory_space<vmem>>, vector<32x1xf32>
    %c0_13 = arith.constant 0 : index
    %c4 = arith.constant 4 : index
    %27 = vector.load %arg4[%c0_13, %c4] : memref<32x8xf32, #tpu.memory_space<vmem>>, vector<32x1xf32>
    %c1_i32_14 = arith.constant 1 : i32
    %28 = vector.broadcast %c1_i32_14 : i32 to vector<32x128xi32>
    %29 = arith.cmpi sge, %23, %28 : vector<32x128xi32>
    %c63_i32 = arith.constant 63 : i32
    %30 = vector.broadcast %c63_i32 : i32 to vector<32x128xi32>
    %31 = arith.cmpi slt, %23, %30 : vector<32x128xi32>
    %c1_i32_15 = arith.constant 1 : i32
    %32 = tpu.dynamic_rotate %6 by %c1_i32_15 dim 1 : vector<32x128xf32>, i32 -> vector<32x128xf32>
    %cst_16 = arith.constant 0.000000e+00 : f32
    %33 = vector.broadcast %cst_16 : f32 to vector<32x128xf32>
    %34 = arith.select %29, %32, %33 : vector<32x128xi1>, vector<32x128xf32>
    %c127_i32 = arith.constant 127 : i32
    %35 = tpu.dynamic_rotate %6 by %c127_i32 dim 1 : vector<32x128xf32>, i32 -> vector<32x128xf32>
    %cst_17 = arith.constant 0.000000e+00 : f32
    %36 = vector.broadcast %cst_17 : f32 to vector<32x128xf32>
    %37 = arith.select %31, %35, %36 : vector<32x128xi1>, vector<32x128xf32>
    %38 = tpu.concatenate %34, %6, %37 in 0 : vector<32x128xf32>, vector<32x128xf32>, vector<32x128xf32> -> vector<96x128xf32>
    %cst_18 = arith.constant dense<0.000000e+00> : vector<32x128xf32>
    %39 = tpu.matmul %24, %38, %cst_18 {dimension_numbers = #tpu.dot_dimension_numbers<[1], [0], [0], [1], [0, 0, 1, 1], [], []>} : vector<32x96xf32>, vector<96x128xf32>, vector<32x128xf32> -> vector<32x128xf32>
    %40 = vector.broadcast %26 : vector<32x1xf32> to vector<32x128xf32>
    %41 = arith.addf %39, %40 : vector<32x128xf32>
    %cst_19 = arith.constant 0.000000e+00 : f32
    %42 = vector.broadcast %cst_19 : f32 to vector<32x128xf32>
    %43 = arith.maximumf %41, %42 : vector<32x128xf32>
    %cst_20 = arith.constant dense<0.000000e+00> : vector<32x128xf32>
    %44 = tpu.matmul %25, %43, %cst_20 {dimension_numbers = #tpu.dot_dimension_numbers<[1], [0], [0], [1], [0, 0, 1, 1], [], []>} : vector<32x32xf32>, vector<32x128xf32>, vector<32x128xf32> -> vector<32x128xf32>
    %45 = vector.broadcast %27 : vector<32x1xf32> to vector<32x128xf32>
    %46 = arith.addf %44, %45 : vector<32x128xf32>
    %47 = arith.addf %6, %46 : vector<32x128xf32>
    %48 = vector.broadcast %1 : vector<1x128xf32> to vector<32x128xf32>
    %49 = arith.mulf %47, %48 : vector<32x128xf32>
    %c64 = arith.constant 64 : index
    %c0_21 = arith.constant 0 : index
    %50 = vector.load %arg3[%c64, %c0_21] : memref<232x96xf32, #tpu.memory_space<vmem>>, vector<32x96xf32>
    %c160 = arith.constant 160 : index
    %c0_22 = arith.constant 0 : index
    %51 = vector.load %arg3[%c160, %c0_22] : memref<232x96xf32, #tpu.memory_space<vmem>>, vector<32x32xf32>
    %c0_23 = arith.constant 0 : index
    %c2 = arith.constant 2 : index
    %52 = vector.load %arg4[%c0_23, %c2] : memref<32x8xf32, #tpu.memory_space<vmem>>, vector<32x1xf32>
    %c0_24 = arith.constant 0 : index
    %c5 = arith.constant 5 : index
    %53 = vector.load %arg4[%c0_24, %c5] : memref<32x8xf32, #tpu.memory_space<vmem>>, vector<32x1xf32>
    %c2_i32 = arith.constant 2 : i32
    %54 = vector.broadcast %c2_i32 : i32 to vector<32x128xi32>
    %55 = arith.cmpi sge, %23, %54 : vector<32x128xi32>
    %c62_i32 = arith.constant 62 : i32
    %56 = vector.broadcast %c62_i32 : i32 to vector<32x128xi32>
    %57 = arith.cmpi slt, %23, %56 : vector<32x128xi32>
    %c2_i32_25 = arith.constant 2 : i32
    %58 = tpu.dynamic_rotate %49 by %c2_i32_25 dim 1 : vector<32x128xf32>, i32 -> vector<32x128xf32>
    %cst_26 = arith.constant 0.000000e+00 : f32
    %59 = vector.broadcast %cst_26 : f32 to vector<32x128xf32>
    %60 = arith.select %55, %58, %59 : vector<32x128xi1>, vector<32x128xf32>
    %c126_i32 = arith.constant 126 : i32
    %61 = tpu.dynamic_rotate %49 by %c126_i32 dim 1 : vector<32x128xf32>, i32 -> vector<32x128xf32>
    %cst_27 = arith.constant 0.000000e+00 : f32
    %62 = vector.broadcast %cst_27 : f32 to vector<32x128xf32>
    %63 = arith.select %57, %61, %62 : vector<32x128xi1>, vector<32x128xf32>
    %64 = tpu.concatenate %60, %49, %63 in 0 : vector<32x128xf32>, vector<32x128xf32>, vector<32x128xf32> -> vector<96x128xf32>
    %cst_28 = arith.constant dense<0.000000e+00> : vector<32x128xf32>
    %65 = tpu.matmul %50, %64, %cst_28 {dimension_numbers = #tpu.dot_dimension_numbers<[1], [0], [0], [1], [0, 0, 1, 1], [], []>} : vector<32x96xf32>, vector<96x128xf32>, vector<32x128xf32> -> vector<32x128xf32>
    %66 = vector.broadcast %52 : vector<32x1xf32> to vector<32x128xf32>
    %67 = arith.addf %65, %66 : vector<32x128xf32>
    %cst_29 = arith.constant 0.000000e+00 : f32
    %68 = vector.broadcast %cst_29 : f32 to vector<32x128xf32>
    %69 = arith.maximumf %67, %68 : vector<32x128xf32>
    %cst_30 = arith.constant dense<0.000000e+00> : vector<32x128xf32>
    %70 = tpu.matmul %51, %69, %cst_30 {dimension_numbers = #tpu.dot_dimension_numbers<[1], [0], [0], [1], [0, 0, 1, 1], [], []>} : vector<32x32xf32>, vector<32x128xf32>, vector<32x128xf32> -> vector<32x128xf32>
    %71 = vector.broadcast %53 : vector<32x1xf32> to vector<32x128xf32>
    %72 = arith.addf %70, %71 : vector<32x128xf32>
    %73 = arith.addf %49, %72 : vector<32x128xf32>
    %74 = vector.broadcast %1 : vector<1x128xf32> to vector<32x128xf32>
    %75 = arith.mulf %73, %74 : vector<32x128xf32>
    %c96 = arith.constant 96 : index
    %c0_31 = arith.constant 0 : index
    %76 = vector.load %arg3[%c96, %c0_31] : memref<232x96xf32, #tpu.memory_space<vmem>>, vector<32x96xf32>
    %c192 = arith.constant 192 : index
    %c0_32 = arith.constant 0 : index
    %77 = vector.load %arg3[%c192, %c0_32] : memref<232x96xf32, #tpu.memory_space<vmem>>, vector<32x32xf32>
    %c0_33 = arith.constant 0 : index
    %c3 = arith.constant 3 : index
    %78 = vector.load %arg4[%c0_33, %c3] : memref<32x8xf32, #tpu.memory_space<vmem>>, vector<32x1xf32>
    %c0_34 = arith.constant 0 : index
    %c6 = arith.constant 6 : index
    %79 = vector.load %arg4[%c0_34, %c6] : memref<32x8xf32, #tpu.memory_space<vmem>>, vector<32x1xf32>
    %c4_i32 = arith.constant 4 : i32
    %80 = vector.broadcast %c4_i32 : i32 to vector<32x128xi32>
    %81 = arith.cmpi sge, %23, %80 : vector<32x128xi32>
    %c60_i32 = arith.constant 60 : i32
    %82 = vector.broadcast %c60_i32 : i32 to vector<32x128xi32>
    %83 = arith.cmpi slt, %23, %82 : vector<32x128xi32>
    %c4_i32_35 = arith.constant 4 : i32
    %84 = tpu.dynamic_rotate %75 by %c4_i32_35 dim 1 : vector<32x128xf32>, i32 -> vector<32x128xf32>
    %cst_36 = arith.constant 0.000000e+00 : f32
    %85 = vector.broadcast %cst_36 : f32 to vector<32x128xf32>
    %86 = arith.select %81, %84, %85 : vector<32x128xi1>, vector<32x128xf32>
    %c124_i32 = arith.constant 124 : i32
    %87 = tpu.dynamic_rotate %75 by %c124_i32 dim 1 : vector<32x128xf32>, i32 -> vector<32x128xf32>
    %cst_37 = arith.constant 0.000000e+00 : f32
    %88 = vector.broadcast %cst_37 : f32 to vector<32x128xf32>
    %89 = arith.select %83, %87, %88 : vector<32x128xi1>, vector<32x128xf32>
    %90 = tpu.concatenate %86, %75, %89 in 0 : vector<32x128xf32>, vector<32x128xf32>, vector<32x128xf32> -> vector<96x128xf32>
    %cst_38 = arith.constant dense<0.000000e+00> : vector<32x128xf32>
    %91 = tpu.matmul %76, %90, %cst_38 {dimension_numbers = #tpu.dot_dimension_numbers<[1], [0], [0], [1], [0, 0, 1, 1], [], []>} : vector<32x96xf32>, vector<96x128xf32>, vector<32x128xf32> -> vector<32x128xf32>
    %92 = vector.broadcast %78 : vector<32x1xf32> to vector<32x128xf32>
    %93 = arith.addf %91, %92 : vector<32x128xf32>
    %cst_39 = arith.constant 0.000000e+00 : f32
    %94 = vector.broadcast %cst_39 : f32 to vector<32x128xf32>
    %95 = arith.maximumf %93, %94 : vector<32x128xf32>
    %cst_40 = arith.constant dense<0.000000e+00> : vector<32x128xf32>
    %96 = tpu.matmul %77, %95, %cst_40 {dimension_numbers = #tpu.dot_dimension_numbers<[1], [0], [0], [1], [0, 0, 1, 1], [], []>} : vector<32x32xf32>, vector<32x128xf32>, vector<32x128xf32> -> vector<32x128xf32>
    %97 = vector.broadcast %79 : vector<32x1xf32> to vector<32x128xf32>
    %98 = arith.addf %96, %97 : vector<32x128xf32>
    %99 = arith.addf %75, %98 : vector<32x128xf32>
    %100 = vector.broadcast %1 : vector<1x128xf32> to vector<32x128xf32>
    %101 = arith.mulf %99, %100 : vector<32x128xf32>
    %c224 = arith.constant 224 : index
    %c0_41 = arith.constant 0 : index
    %102 = vector.load %arg3[%c224, %c0_41] : memref<232x96xf32, #tpu.memory_space<vmem>>, vector<8x32xf32>
    %c0_42 = arith.constant 0 : index
    %c7 = arith.constant 7 : index
    %103 = vector.load %arg4[%c0_42, %c7] : memref<32x8xf32, #tpu.memory_space<vmem>>, vector<8x1xf32>
    %cst_43 = arith.constant dense<0.000000e+00> : vector<8x128xf32>
    %104 = tpu.matmul %102, %101, %cst_43 {dimension_numbers = #tpu.dot_dimension_numbers<[1], [0], [0], [1], [0, 0, 1, 1], [], []>} : vector<8x32xf32>, vector<32x128xf32>, vector<8x128xf32> -> vector<8x128xf32>
    %105 = vector.broadcast %103 : vector<8x1xf32> to vector<8x128xf32>
    %106 = arith.addf %104, %105 : vector<8x128xf32>
    %107 = vector.broadcast %1 : vector<1x128xf32> to vector<8x128xf32>
    %108 = arith.mulf %106, %107 : vector<8x128xf32>
    %c0_44 = arith.constant 0 : index
    %c0_45 = arith.constant 0 : index
    %109 = vector.load %arg5[%c0_44, %c0_45] : memref<8x128xf32, #tpu.memory_space<vmem>>, vector<8x128xf32>
    tpu.vector_store %arg5[%c0_44, %c0_45], %108 {strides = array<i32>} : memref<8x128xf32, #tpu.memory_space<vmem>>, vector<8x128xf32>,
    return
  }
  func.func @transform_0(%arg0: i32) -> (i32, i32) {
    %c0_i32 = arith.constant 0 : i32
    %c0_i32_0 = arith.constant 0 : i32
    %c0_i32_1 = arith.constant 0 : i32
    return %c0_i32, %c0_i32_0 : i32, i32
  }
  func.func @transform_1(%arg0: i32) -> (i32, i32) {
    %c0_i32 = arith.constant 0 : i32
    %c0_i32_0 = arith.constant 0 : i32
    %c0_i32_1 = arith.constant 0 : i32
    return %c0_i32, %c0_i32_0 : i32, i32
  }
  func.func @transform_2(%arg0: i32) -> (i32, i32) {
    %c0_i32 = arith.constant 0 : i32
    %c0_i32_0 = arith.constant 0 : i32
    %c0_i32_1 = arith.constant 0 : i32
    return %c0_i32, %c0_i32_0 : i32, i32
  }
  func.func @transform_3(%arg0: i32) -> (i32, i32) {
    %c0_i32 = arith.constant 0 : i32
    %c0_i32_0 = arith.constant 0 : i32
    %c0_i32_1 = arith.constant 0 : i32
    return %c0_i32, %c0_i32_0 : i32, i32
  }
  func.func @transform_4(%arg0: i32) -> (i32, i32) {
    %c0_i32 = arith.constant 0 : i32
    %c0_i32_0 = arith.constant 0 : i32
    %c0_i32_1 = arith.constant 0 : i32
    return %c0_i32, %c0_i32_0 : i32, i32
  }
}

</mosaic_0001>

<bundles_post_ra>
// kernel: tpu_custom_call.1
= control target key start
LH: loop header
LB: loop body
LE: loop exit
PB: predicated region body
PF: predicated region fallthrough
CT: control target
= control target key end

     0   :  { %vm49_vm0 = vcmask 130048   ;;  %v759_v3 = vmov 0   ;;  %s1079_s0 = inlined_call_operand.vmem [shape: f32[16,128], index: 0, kind: input, shape index: {}]   ;;  %s1080_s1 = inlined_call_operand.vmem [shape: f32[1,128], index: 1, kind: input, shape index: {}]   ;;  %s1081_s2 = inlined_call_operand.vmem [shape: f32[232,96], index: 2, kind: input, shape index: {}]   ;;  %s1082_s3 = inlined_call_operand.vmem [shape: f32[32,8], index: 3, kind: input, shape index: {}]   ;;  %s1083_s4 = inlined_call_operand.hbm [shape: f32[8,128], index: 4, kind: output, shape index: {}]  }
   0x1   :  { %v19_v0 = vld [vmem:[%s1079_s0 + $0x8] sm:$0xff]  ;;  %v18_v1 = vld [vmem:[%s1079_s0] sm:$0xff]  ;;  %711 = vset.pattern.permute.xlu1 %v759_v3  ;;  %710 = vset.pattern.permute.xlu0 %v759_v3  ;;  %v817_v5 = vld [vmem:[%s1082_s3 + $0x18] sm:$0xff] }
   0x2   :  { %76 = vmatpush.msra.mxu0 %v19_v0  ;;  %v21_v2 = vld [vmem:[%s1081_s2] sm:$0xff]  ;;  %v811_v4 = vld [vmem:[%s1082_s3 + $0x8] sm:$0xff]  ;;  %46 = vperm.xlu0 %710, %v817_v5  }
   0x3   :  { %36 = vperm.xlu1 %711, %v811_v4  }
   0x4   :  { %77 = vmatpush.msra.mxu0 %v18_v1 }
   0x5   :  { %9 = vsyncpa [#allocation3], 0  ;;  %638 = vmatmul.msk.f32.vlgmr.msra.gmra.mxu0 %vm49_vm0, %v21_v2  ;;  %v824_v6 = vld [vmem:[%s1082_s3] sm:$0xff]  ;;  %v829_v7 = vld [vmem:[%s1082_s3 + $0x10] sm:$0xff]  ;;  %s760_s3 = smov 127   ;;  %s761_s8 = smov 1   ;;  %v91_v23 = vlaneseq }
   0x6   :  { %v22_v8 = vld [vmem:[%s1081_s2 + $0x8] sm:$0xff]  ;;  %v23_v9 = vld [vmem:[%s1081_s2 + $0x10] sm:$0xff]  ;;  %v24_v10 = vld [vmem:[%s1081_s2 + $0x18] sm:$0xff]  ;;  %v762_v26 = vmov 1   ;;  %vm155_vm3 = vcmask 785408   ;;  %v763_v43 = vmov 4  }
   0x7   :  { %v92_v24 = vand.u32 127, %v91_v23  ;;  %714 = vset.pattern.permute.xlu2 %v762_v26  ;;  %v105_v34 = vld [vmem:[%s1081_s2 + $0x20] sm:$0xff]  ;;  %v106_v36 = vld [vmem:[%s1081_s2 + $0x28] sm:$0xff]  ;;  %v107_v37 = vld [vmem:[%s1081_s2 + $0x30] sm:$0xff]  ;;  %vm217_vm4 = vcmask 261120   ;;  %s764_s26 = smov 126  }
   0x8   :  { %v108_v38 = vld [vmem:[%s1081_s2 + $0x38] sm:$0xff]  ;;  %v109_v56 = vld [vmem:[%s1081_s2 + $0x80] sm:$0xff]  ;;  %v110_v57 = vld [vmem:[%s1081_s2 + $0x88] sm:$0xff]  ;;  %s768_s16 = smov 124   ;;  %s769_s17 = smov 4  }
   0x9   :  { %v861_v25 = vand.u32 63, %v92_v24  ;;  %v111_v58 = vld [vmem:[%s1081_s2 + $0x90] sm:$0xff]  ;;  %v112_v59 = vld [vmem:[%s1081_s2 + $0x98] sm:$0xff]  ;;  %v920_v0 = vld [vmem:[%s1080_s1] ss:$0 sm:$0xff]  ;;  %s765_s1 = smov 2  }
   0xa   :  { %41 = vperm.xlu0 %710, %v829_v7   ;;  %s629_s11 = sshll.u32 %s1083_s4, 4  ;;  %s630_s11 = int_to_ptr.hbm [resolvable:$true] %s629_s11 }
   0xb   :  { %31 = vperm.xlu1 %711, %v824_v6   ;;  %vm114_vm1 = vcmp.lt.s32.totalorder %v861_v25, 63  ;;  %vm113_vm2 = vcmp.ge.s32.totalorder %v861_v25, 1  ;;  %vm279_vm5 = vcmp.lt.s32.totalorder %v861_v25, 62  ;;  %vm278_vm6 = vcmp.ge.s32.totalorder %v861_v25, 2 }
   0xc   :  { %vm439_vm7 = vcmp.lt.s32.totalorder %v861_v25, 60  ;;  %vm438_vm8 = vcmp.ge.s32.totalorder %v861_v25, 4  ;;  %v432_v25 = vld [vmem:[%s1081_s2 + $0x70] sm:$0xff] }
   0xd   :  { %639 = vmatmul.msk.f32.gmra.mxu0 %vm49_vm0, %v22_v8 }
  0x12   :  { %712 = vset.pattern.permute.xlu0 %v762_v26 }
  0x13   :  { %713 = vset.pattern.permute.xlu1 %v762_v26 }
  0x15   :  { %640 = vmatmul.msk.f32.gmra.mxu0 %vm49_vm0, %v23_v9 }
  0x1d   :  { %641 = vmatmul.msk.f32.gmra.mxu0 %vm49_vm0, %v24_v10 }
  0x74   :  { %v47_v15 = vpop.permute.xlu0 %46 }
  0x75   :  { %v37_v11 = vpop.permute.xlu1 %36 }
  0x7c   :  { %v42_v18 = vpop.permute.xlu0 %41 }
  0x7d   :  { %v32_v12 = vpop.permute.xlu1 %31 }
  0x82   :  { %v79_v13 = vpop.f32.mrf.mxu0 }
  0x83   :  { %v845_v14 = vadd.f32 %v79_v13, %v32_v12 }
  0x85   :  { %127 = vrot.lane.b32.xlu1 %v845_v14, %s760_s3 }
  0x8a   :  { %v82_v16 = vpop.f32.mrf.mxu0 }
  0x8b   :  { %v848_v17 = vadd.f32 %v82_v16, %v37_v11 }
  0x8d   :  { %129 = vrot.lane.b32.xlu0 %v848_v17, %s760_s3  ;;  %117 = vrot.lane.b32.xlu1 %v848_v17, %s761_s8 }
  0x92   :  { %v85_v19 = vpop.f32.mrf.mxu0 }
  0x93   :  { %v852_v20 = vadd.f32 %v85_v19, %v42_v18 }
  0x95   :  { %119 = vrot.lane.b32.xlu0 %v852_v20, %s761_s8  ;;  %148 = vperm.xlu1 %713, %v829_v7  }
  0x9a   :  { %v88_v21 = vpop.f32.mrf.mxu0 }
  0x9b   :  { %v855_v22 = vadd.f32 %v88_v21, %v47_v15 }
  0x9d   :  { %133 = vrot.lane.b32.xlu2 %v855_v22, %s760_s3  ;;  %152 = vperm.xlu0 %712, %v817_v5  }
  0x9e   :  { %140 = vperm.xlu1 %713, %v824_v6  }
  0xa5   :  { %131 = vrot.lane.b32.xlu2 %v852_v20, %s760_s3  ;;  %716 = vset.pattern.permute.xlu0 %v763_v43  ;;  %s773_s3 = smov [#allocation2]  }
  0xa6   :  { %717 = vset.pattern.permute.xlu1 %v763_v43  ;;  %210 = vperm.xlu0 %716, %v829_v7  }
  0xa7   :  { %206 = vperm.xlu1 %717, %v811_v4  }
  0xad   :  { %121 = vrot.lane.b32.xlu2 %v855_v22, %s761_s8 }
  0xb5   :  { %115 = vrot.lane.b32.xlu2 %v845_v14, %s761_s8  ;;  %s627_s8 = sshll.u32 %s773_s3, 4  ;;  %s628_s8 = int_to_ptr.vmem [resolvable:$true] %s627_s8 }
  0xbd   :  { %144 = vperm.xlu2 %714, %v811_v4  }
  0xc5   :  { %715 = vset.pattern.permute.xlu2 %v763_v43 }
  0xc6   :  { %214 = vperm.xlu2 %715, %v817_v5  }
  0xce   :  { %202 = vperm.xlu2 %715, %v824_v6  }
  0xf7   :  { %v134_v27 = vpop.permute.xlu2 %133  ;;  %v128_v30 = vpop.permute.xlu1 %127 }
  0xf8   :  { %642 = vmatpush.msk.msra.mxu1 %vm114_vm1, %v134_v27 }
  0xff   :  { %v132_v28 = vpop.permute.xlu2 %131  ;;  %v130_v29 = vpop.permute.xlu0 %129 }
 0x100   :  { %643 = vmatpush.msk.msra.mxu1 %vm114_vm1, %v132_v28  ;;  %v118_v33 = vpop.permute.xlu1 %117 }
 0x102   :  { %644 = vmatpush.msk.msra.mxu1 %vm114_vm1, %v130_v29 }
 0x104   :  { %645 = vmatpush.msk.msra.mxu1 %vm114_vm1, %v128_v30  ;;  %v270_v30 = vld [vmem:[%s1081_s2 + $0x40] sm:$0xff] }
 0x106   :  { %176 = vmatpush.msra.mxu1 %v855_v22 }
 0x107   :  { %v122_v31 = vpop.permute.xlu2 %121  ;;  %v120_v32 = vpop.permute.xlu0 %119 }
 0x108   :  { %177 = vmatpush.msra.mxu1 %v852_v20  ;;  %v149_v41 = vpop.permute.xlu1 %148 }
 0x10a   :  { %178 = vmatpush.msra.mxu1 %v848_v17 }
 0x10c   :  { %179 = vmatpush.msra.mxu1 %v845_v14 }
 0x10e   :  { %646 = vmatpush.msk.msra.mxu1 %vm113_vm2, %v122_v31 }
 0x10f   :  { %v116_v35 = vpop.permute.xlu2 %115  ;;  %v153_v44 = vpop.permute.xlu0 %152 }
 0x110   :  { %647 = vmatpush.msk.msra.mxu1 %vm113_vm2, %v120_v32  ;;  %v141_v49 = vpop.permute.xlu1 %140  ;;  %v271_v32 = vld [vmem:[%s1081_s2 + $0x48] sm:$0xff] }
 0x112   :  { %648 = vmatpush.msk.msra.mxu1 %vm113_vm2, %v118_v33  ;;  %v272_v33 = vld [vmem:[%s1081_s2 + $0x50] sm:$0xff] }
 0x114   :  { %649 = vmatpush.msk.msra.mxu1 %vm113_vm2, %v116_v35 }
 0x115   :  { %650 = vmatmul.msk.f32.vlgmr.msra.gmra.mxu1 %vm155_vm3, %v105_v34  ;;  %v273_v34 = vld [vmem:[%s1081_s2 + $0x58] sm:$0xff] }
 0x117   :  { %v145_v45 = vpop.permute.xlu2 %144 }
 0x118   :  { %v211_v3 = vpop.permute.xlu0 %210 }
 0x119   :  { %v207_v61 = vpop.permute.xlu1 %206 }
 0x11d   :  { %651 = vmatmul.msk.f32.gmra.mxu1 %vm155_vm3, %v106_v36 }
 0x120   :  { %v215_v8 = vpop.permute.xlu2 %214 }
 0x125   :  { %652 = vmatmul.msk.f32.gmra.mxu1 %vm155_vm3, %v107_v37 }
 0x128   :  { %v203_v16 = vpop.permute.xlu2 %202 }
 0x12d   :  { %653 = vmatmul.msk.f32.gmra.mxu1 %vm155_vm3, %v108_v38 }
 0x192   :  { %v185_v39 = vpop.f32.mrf.mxu1 }
 0x193   :  { %v186_v52 = vadd.f32 %v185_v39, %v141_v49  ;;  %v767_v39 = vmov 5  }
 0x195   :  { %v197_v55 = vmax.f32 %v186_v52, 0.0  ;;  %v274_v52 = vld [vmem:[%s1081_s2 + $0xa0] sm:$0xff] }
 0x19a   :  { %v188_v40 = vpop.f32.mrf.mxu1 }
 0x19b   :  { %v189_v50 = vadd.f32 %v188_v40, %v145_v45 }
 0x19d   :  { %v198_v54 = vmax.f32 %v189_v50, 0.0 }
 0x1a2   :  { %v191_v42 = vpop.f32.mrf.mxu1 }
 0x1a3   :  { %v192_v47 = vadd.f32 %v191_v42, %v149_v41 }
 0x1a5   :  { %v199_v53 = vmax.f32 %v192_v47, 0.0 }
 0x1aa   :  { %v194_v46 = vpop.f32.mrf.mxu1 }
 0x1ab   :  { %v195_v48 = vadd.f32 %v194_v46, %v153_v44 }
 0x1ad   :  { %v200_v51 = vmax.f32 %v195_v48, 0.0 }
 0x1af   :  { %242 = vmatpush.msra.mxu2 %v200_v51 }
 0x1b1   :  { %243 = vmatpush.msra.mxu2 %v199_v53  ;;  %v275_v53 = vld [vmem:[%s1081_s2 + $0xa8] sm:$0xff] }
 0x1b3   :  { %244 = vmatpush.msra.mxu2 %v198_v54  ;;  %v276_v54 = vld [vmem:[%s1081_s2 + $0xb0] sm:$0xff] }
 0x1b5   :  { %245 = vmatpush.msra.mxu2 %v197_v55  ;;  %v277_v55 = vld [vmem:[%s1081_s2 + $0xb8] sm:$0xff] }
 0x1b6   :  { %654 = vmatmul.msk.f32.vlgmr.msra.gmra.mxu2 %vm217_vm4, %v109_v56 }
 0x1be   :  { %655 = vmatmul.msk.f32.gmra.mxu2 %vm217_vm4, %v110_v57 }
 0x1c6   :  { %656 = vmatmul.msk.f32.gmra.mxu2 %vm217_vm4, %v111_v58 }
 0x1ce   :  { %657 = vmatmul.msk.f32.gmra.mxu2 %vm217_vm4, %v112_v59 }
 0x239   :  { %v247_v60 = vpop.f32.mrf.mxu2 }
 0x23a   :  { %v248_v18 = vadd.f32 %v247_v60, %v203_v16 }
 0x241   :  { %v250_v62 = vpop.f32.mrf.mxu2 }
 0x242   :  { %v251_v63 = vadd.f32 %v250_v62, %v207_v61 }
 0x244   :  { %v260_v1 = vadd.f32 %v251_v63, %v848_v17 }
 0x246   :  { %v924_v2 = vmul.f32 %v920_v0, %v260_v1 }
 0x248   :  { %294 = vrot.lane.b32.xlu0 %v924_v2, %s764_s26 }
 0x249   :  { %v253_v9 = vpop.f32.mrf.mxu2 }
 0x24a   :  { %v254_v10 = vadd.f32 %v253_v9, %v211_v3 }
 0x24c   :  { %v261_v11 = vadd.f32 %v254_v10, %v852_v20  ;;  %v259_v20 = vadd.f32 %v248_v18, %v845_v14  ;;  %v770_v18 = vmov 3  }
 0x24e   :  { %v929_v12 = vmul.f32 %v920_v0, %v261_v11  ;;  %v941_v21 = vmul.f32 %v920_v0, %v259_v20 }
 0x250   :  { %296 = vrot.lane.b32.xlu2 %v929_v12, %s764_s26  ;;  %284 = vrot.lane.b32.xlu0 %v929_v12, %s765_s1 }
 0x251   :  { %v256_v13 = vpop.f32.mrf.mxu2 }
 0x252   :  { %v257_v15 = vadd.f32 %v256_v13, %v215_v8 }
 0x254   :  { %v262_v17 = vadd.f32 %v257_v15, %v855_v22  ;;  %v766_v22 = vmov 2  }
 0x255   :  { %719 = vset.pattern.permute.xlu1 %v766_v22  ;;  %718 = vset.pattern.permute.xlu0 %v766_v22 }
 0x256   :  { %v935_v19 = vmul.f32 %v920_v0, %v262_v17  ;;  %720 = vset.pattern.permute.xlu2 %v766_v22 }
 0x258   :  { %298 = vrot.lane.b32.xlu1 %v935_v19, %s764_s26  ;;  %286 = vrot.lane.b32.xlu2 %v935_v19, %s765_s1 }
 0x259   :  { %317 = vperm.xlu0 %718, %v817_v5  }
 0x260   :  { %280 = vrot.lane.b32.xlu2 %v941_v21, %s765_s1  ;;  %292 = vrot.lane.b32.xlu1 %v941_v21, %s764_s26 }
 0x261   :  { %722 = vset.pattern.permute.xlu0 %v767_v39 }
 0x262   :  { %374 = vperm.xlu0 %722, %v829_v7  }
 0x268   :  { %282 = vrot.lane.b32.xlu1 %v924_v2, %s765_s1  ;;  %309 = vperm.xlu2 %720, %v811_v4  }
 0x26a   :  { %724 = vset.pattern.permute.xlu0 %v770_v18 }
 0x270   :  { %313 = vperm.xlu1 %719, %v829_v7   ;;  %721 = vset.pattern.permute.xlu2 %v767_v39 }
 0x271   :  { %378 = vperm.xlu2 %721, %v817_v5  }
 0x278   :  { %305 = vperm.xlu1 %719, %v824_v6  }
 0x279   :  { %366 = vperm.xlu2 %721, %v824_v6  }
 0x280   :  { %723 = vset.pattern.permute.xlu1 %v767_v39 }
 0x281   :  { %370 = vperm.xlu1 %723, %v811_v4   ;;  %726 = vset.pattern.permute.xlu2 %v770_v18 }
 0x289   :  { %725 = vset.pattern.permute.xlu1 %v770_v18 }
 0x2aa   :  { %v297_v23 = vpop.permute.xlu2 %296 }
 0x2b2   :  { %v287_v27 = vpop.permute.xlu2 %286 }
 0x2ba   :  { %v295_v24 = vpop.permute.xlu0 %294  ;;  %v281_v31 = vpop.permute.xlu2 %280 }
 0x2c2   :  { %v285_v28 = vpop.permute.xlu0 %284  ;;  %v310_v41 = vpop.permute.xlu2 %309 }
 0x2ca   :  { %v299_v14 = vpop.permute.xlu1 %298 }
 0x2cb   :  { %658 = vmatpush.msk.msra.mxu3 %vm279_vm5, %v299_v14  ;;  %v318_v40 = vpop.permute.xlu0 %317  ;;  %v379_v63 = vpop.permute.xlu2 %378 }
 0x2cd   :  { %659 = vmatpush.msk.msra.mxu3 %vm279_vm5, %v297_v23 }
 0x2cf   :  { %660 = vmatpush.msk.msra.mxu3 %vm279_vm5, %v295_v24 }
 0x2d2   :  { %v293_v26 = vpop.permute.xlu1 %292 }
 0x2d3   :  { %661 = vmatpush.msk.msra.mxu3 %vm279_vm5, %v293_v26  ;;  %v367_v11 = vpop.permute.xlu2 %366  ;;  %v430_v26 = vld [vmem:[%s1081_s2 + $0x60] sm:$0xff] }
 0x2d4   :  { %v375_v62 = vpop.permute.xlu0 %374 }
 0x2d5   :  { %340 = vmatpush.msra.mxu3 %v935_v19 }
 0x2d7   :  { %341 = vmatpush.msra.mxu3 %v929_v12 }
 0x2d9   :  { %342 = vmatpush.msra.mxu3 %v924_v2 }
 0x2da   :  { %v283_v29 = vpop.permute.xlu1 %282 }
 0x2db   :  { %343 = vmatpush.msra.mxu3 %v941_v21 }
 0x2dd   :  { %662 = vmatpush.msk.msra.mxu3 %vm278_vm6, %v287_v27 }
 0x2df   :  { %663 = vmatpush.msk.msra.mxu3 %vm278_vm6, %v285_v28  ;;  %v431_v28 = vld [vmem:[%s1081_s2 + $0x68] sm:$0xff] }
 0x2e1   :  { %664 = vmatpush.msk.msra.mxu3 %vm278_vm6, %v283_v29  ;;  %v433_v29 = vld [vmem:[%s1081_s2 + $0x78] sm:$0xff] }
 0x2e2   :  { %v314_v37 = vpop.permute.xlu1 %313 }
 0x2e3   :  { %665 = vmatpush.msk.msra.mxu3 %vm278_vm6, %v281_v31 }
 0x2e4   :  { %666 = vmatmul.msk.f32.vlgmr.msra.gmra.mxu3 %vm155_vm3, %v270_v30 }
 0x2ea   :  { %v306_v45 = vpop.permute.xlu1 %305 }
 0x2ec   :  { %667 = vmatmul.msk.f32.gmra.mxu3 %vm155_vm3, %v271_v32 }
 0x2f3   :  { %v371_v57 = vpop.permute.xlu1 %370 }
 0x2f4   :  { %668 = vmatmul.msk.f32.gmra.mxu3 %vm155_vm3, %v272_v33 }
 0x2fc   :  { %669 = vmatmul.msk.f32.gmra.mxu3 %vm155_vm3, %v273_v34  ;;  %v771_v34 = vmov 6  }
 0x367   :  { %v349_v35 = vpop.f32.mrf.mxu3 }
 0x368   :  { %v350_v48 = vadd.f32 %v349_v35, %v306_v45 }
 0x36a   :  { %v361_v51 = vmax.f32 %v350_v48, 0.0  ;;  %v772_v48 = vmov 7  }
 0x36f   :  { %v352_v36 = vpop.f32.mrf.mxu3 }
 0x370   :  { %v353_v46 = vadd.f32 %v352_v36, %v310_v41 }
 0x372   :  { %v362_v50 = vmax.f32 %v353_v46, 0.0  ;;  %v435_v46 = vld [vmem:[%s1081_s2 + $0xc8] sm:$0xff] }
 0x377   :  { %v355_v38 = vpop.f32.mrf.mxu3 }
 0x378   :  { %v356_v43 = vadd.f32 %v355_v38, %v314_v37 }
 0x37a   :  { %v363_v49 = vmax.f32 %v356_v43, 0.0 }
 0x37f   :  { %v358_v42 = vpop.f32.mrf.mxu3 }
 0x380   :  { %v359_v44 = vadd.f32 %v358_v42, %v318_v40 }
 0x382   :  { %v364_v47 = vmax.f32 %v359_v44, 0.0 }
 0x384   :  { %405 = vmatpush.msrb.mxu0 %v364_v47  ;;  %v436_v47 = vld [vmem:[%s1081_s2 + $0xd0] sm:$0xff] }
 0x386   :  { %406 = vmatpush.msrb.mxu0 %v363_v49 }
 0x388   :  { %407 = vmatpush.msrb.mxu0 %v362_v50 }
 0x38a   :  { %408 = vmatpush.msrb.mxu0 %v361_v51 }
 0x38b   :  { %670 = vmatmul.msk.f32.vlgmr.msrb.gmra.mxu0 %vm217_vm4, %v274_v52 }
 0x393   :  { %671 = vmatmul.msk.f32.gmra.mxu0 %vm217_vm4, %v275_v53 }
 0x39b   :  { %672 = vmatmul.msk.f32.gmra.mxu0 %vm217_vm4, %v276_v54 }
 0x3a3   :  { %673 = vmatmul.msk.f32.gmra.mxu0 %vm217_vm4, %v277_v55 }
 0x408   :  { %v410_v56 = vpop.f32.mrf.mxu0 }
 0x409   :  { %v411_v15 = vadd.f32 %v410_v56, %v367_v11  ;;  %v590_v11 = vld [vmem:[%s1081_s2 + $0xe0] sm:$0xff] }
 0x410   :  { %v413_v58 = vpop.f32.mrf.mxu0 }
 0x411   :  { %v414_v59 = vadd.f32 %v413_v58, %v371_v57 }
 0x413   :  { %v423_v60 = vadd.f32 %v414_v59, %v924_v2 }
 0x415   :  { %v994_v61 = vmul.f32 %v920_v0, %v423_v60 }
 0x417   :  { %454 = vrot.lane.b32.xlu0 %v994_v61, %s768_s16 }
 0x418   :  { %v416_v1 = vpop.f32.mrf.mxu0 }
 0x419   :  { %v417_v3 = vadd.f32 %v416_v1, %v375_v62 }
 0x41b   :  { %v424_v8 = vadd.f32 %v417_v3, %v929_v12  ;;  %v422_v12 = vadd.f32 %v411_v15, %v941_v21 }
 0x41d   :  { %v999_v9 = vmul.f32 %v920_v0, %v424_v8  ;;  %v1011_v17 = vmul.f32 %v920_v0, %v422_v12 }
 0x41f   :  { %456 = vrot.lane.b32.xlu2 %v999_v9, %s768_s16  ;;  %444 = vrot.lane.b32.xlu0 %v999_v9, %s769_s17 }
 0x420   :  { %v419_v2 = vpop.f32.mrf.mxu0 }
 0x421   :  { %v420_v10 = vadd.f32 %v419_v2, %v379_v63 }
 0x423   :  { %v425_v13 = vadd.f32 %v420_v10, %v935_v19 }
 0x425   :  { %v1005_v16 = vmul.f32 %v920_v0, %v425_v13 }
 0x427   :  { %458 = vrot.lane.b32.xlu1 %v1005_v16, %s768_s16  ;;  %446 = vrot.lane.b32.xlu2 %v1005_v16, %s769_s17 }
 0x428   :  { %477 = vperm.xlu0 %724, %v817_v5  }
 0x42f   :  { %440 = vrot.lane.b32.xlu2 %v1011_v17, %s769_s17  ;;  %452 = vrot.lane.b32.xlu1 %v1011_v17, %s768_s16 }
 0x430   :  { %728 = vset.pattern.permute.xlu0 %v771_v34 }
 0x431   :  { %534 = vperm.xlu0 %728, %v829_v7  }
 0x437   :  { %442 = vrot.lane.b32.xlu1 %v994_v61, %s769_s17  ;;  %469 = vperm.xlu2 %726, %v811_v4  }
 0x439   :  { %731 = vset.pattern.permute.xlu0 %v772_v48 }
 0x43f   :  { %473 = vperm.xlu1 %725, %v829_v7   ;;  %727 = vset.pattern.permute.xlu2 %v771_v34  ;;  %v437_v7 = vld [vmem:[%s1081_s2 + $0xd8] sm:$0xff] }
 0x440   :  { %538 = vperm.xlu2 %727, %v817_v5   ;;  %v434_v5 = vld [vmem:[%s1081_s2 + $0xc0] sm:$0xff] }
 0x447   :  { %465 = vperm.xlu1 %725, %v824_v6  }
 0x448   :  { %526 = vperm.xlu2 %727, %v824_v6  }
 0x44f   :  { %729 = vset.pattern.permute.xlu1 %v771_v34 }
 0x450   :  { %530 = vperm.xlu1 %729, %v811_v4  }
 0x458   :  { %730 = vset.pattern.permute.xlu1 %v772_v48 }
 0x459   :  { %594 = vperm.xlu1 %730, %v824_v6  }
 0x479   :  { %v457_v20 = vpop.permute.xlu2 %456 }
 0x481   :  { %v447_v14 = vpop.permute.xlu2 %446 }
 0x489   :  { %v455_v21 = vpop.permute.xlu0 %454  ;;  %v441_v27 = vpop.permute.xlu2 %440 }
 0x491   :  { %v445_v23 = vpop.permute.xlu0 %444  ;;  %v470_v36 = vpop.permute.xlu2 %469 }
 0x499   :  { %v459_v19 = vpop.permute.xlu1 %458 }
 0x49a   :  { %674 = vmatpush.msk.msrb.mxu2 %vm439_vm7, %v459_v19  ;;  %v478_v35 = vpop.permute.xlu0 %477  ;;  %v539_v50 = vpop.permute.xlu2 %538 }
 0x49c   :  { %675 = vmatpush.msk.msrb.mxu2 %vm439_vm7, %v457_v20 }
 0x49e   :  { %676 = vmatpush.msk.msrb.mxu2 %vm439_vm7, %v455_v21 }
 0x4a1   :  { %v453_v22 = vpop.permute.xlu1 %452 }
 0x4a2   :  { %677 = vmatpush.msk.msrb.mxu2 %vm439_vm7, %v453_v22  ;;  %v527_v57 = vpop.permute.xlu2 %526 }
 0x4a3   :  { %v535_v58 = vpop.permute.xlu0 %534 }
 0x4a4   :  { %500 = vmatpush.msrb.mxu2 %v1005_v16 }
 0x4a6   :  { %501 = vmatpush.msrb.mxu2 %v999_v9 }
 0x4a8   :  { %502 = vmatpush.msrb.mxu2 %v994_v61 }
 0x4a9   :  { %v443_v24 = vpop.permute.xlu1 %442 }
 0x4aa   :  { %503 = vmatpush.msrb.mxu2 %v1011_v17 }
 0x4ac   :  { %678 = vmatpush.msk.msrb.mxu2 %vm438_vm8, %v447_v14 }
 0x4ae   :  { %679 = vmatpush.msk.msrb.mxu2 %vm438_vm8, %v445_v23 }
 0x4b0   :  { %680 = vmatpush.msk.msrb.mxu2 %vm438_vm8, %v443_v24 }
 0x4b1   :  { %v474_v32 = vpop.permute.xlu1 %473 }
 0x4b2   :  { %681 = vmatpush.msk.msrb.mxu2 %vm438_vm8, %v441_v27 }
 0x4b3   :  { %682 = vmatmul.msk.f32.vlgmr.msrb.gmra.mxu2 %vm155_vm3, %v430_v26 }
 0x4b9   :  { %v466_v40 = vpop.permute.xlu1 %465 }
 0x4bb   :  { %683 = vmatmul.msk.f32.gmra.mxu2 %vm155_vm3, %v431_v28 }
 0x4c2   :  { %v531_v56 = vpop.permute.xlu1 %530 }
 0x4c3   :  { %684 = vmatmul.msk.f32.gmra.mxu2 %vm155_vm3, %v432_v25 }
 0x4cb   :  { %685 = vmatmul.msk.f32.gmra.mxu2 %vm155_vm3, %v433_v29 }
 0x536   :  { %v509_v30 = vpop.f32.mrf.mxu2 }
 0x537   :  { %v510_v43 = vadd.f32 %v509_v30, %v466_v40 }
 0x539   :  { %v521_v4 = vmax.f32 %v510_v43, 0.0 }
 0x53e   :  { %v512_v31 = vpop.f32.mrf.mxu2 }
 0x53f   :  { %v513_v41 = vadd.f32 %v512_v31, %v470_v36 }
 0x541   :  { %v522_v45 = vmax.f32 %v513_v41, 0.0 }
 0x546   :  { %v515_v33 = vpop.f32.mrf.mxu2 }
 0x547   :  { %v516_v38 = vadd.f32 %v515_v33, %v474_v32 }
 0x549   :  { %v523_v44 = vmax.f32 %v516_v38, 0.0 }
 0x54e   :  { %v518_v37 = vpop.f32.mrf.mxu2 }
 0x54f   :  { %v519_v39 = vadd.f32 %v518_v37, %v478_v35 }
 0x551   :  { %v524_v42 = vmax.f32 %v519_v39, 0.0 }
 0x553   :  { %565 = vmatpush.msrb.mxu1 %v524_v42  ;;  %691 = vmatpush.msrb.mxu3 %v524_v42 }
 0x555   :  { %566 = vmatpush.msrb.mxu1 %v523_v44  ;;  %692 = vmatpush.msrb.mxu3 %v523_v44 }
 0x557   :  { %567 = vmatpush.msrb.mxu1 %v522_v45  ;;  %693 = vmatpush.msrb.mxu3 %v522_v45 }
 0x559   :  { %568 = vmatpush.msrb.mxu1 %v521_v4  ;;  %694 = vmatpush.msrb.mxu3 %v521_v4 }
 0x55a   :  { %686 = vmatmul.msk.f32.vlgmr.msrb.gmra.mxu1 %vm217_vm4, %v434_v5  ;;  %689 = vmatmul.msk.f32.vlgmr.msrb.gmra.mxu3 %vm217_vm4, %v437_v7 }
 0x562   :  { %687 = vmatmul.msk.f32.gmra.mxu1 %vm217_vm4, %v435_v46 }
 0x56a   :  { %688 = vmatmul.msk.f32.gmra.mxu1 %vm217_vm4, %v436_v47 }
 0x5d7   :  { %v570_v49 = vpop.f32.mrf.mxu1 }
 0x5d8   :  { %v571_v62 = vadd.f32 %v570_v49, %v527_v57 }
 0x5da   :  { %v582_v3 = vadd.f32 %v571_v62, %v1011_v17 }
 0x5dc   :  { %v586_v10 = vmul.f32 %v920_v0, %v582_v3 }
 0x5dd   :  { %v579_v51 = vpop.f32.mrf.mxu3 }
 0x5de   :  { %v580_v52 = vadd.f32 %v579_v51, %v539_v50 }
 0x5df   :  { %v573_v53 = vpop.f32.mrf.mxu1 }
 0x5e0   :  { %v585_v54 = vadd.f32 %v580_v52, %v1005_v16  ;;  %v574_v59 = vadd.f32 %v573_v53, %v531_v56 }
 0x5e2   :  { %v589_v55 = vmul.f32 %v920_v0, %v585_v54  ;;  %v583_v1 = vadd.f32 %v574_v59, %v994_v61  ;;  %v595_v61 = vpop.permute.xlu1 %594 }
 0x5e4   :  { %612 = vmatpush.msra.mxu3 %v589_v55  ;;  %v587_v2 = vmul.f32 %v920_v0, %v583_v1 }
 0x5e7   :  { %v576_v60 = vpop.f32.mrf.mxu1 }
 0x5e8   :  { %v577_v63 = vadd.f32 %v576_v60, %v535_v58 }
 0x5ea   :  { %v584_v6 = vadd.f32 %v577_v63, %v999_v9 }
 0x5ec   :  { %v588_v8 = vmul.f32 %v920_v0, %v584_v6 }
 0x5ee   :  { %613 = vmatpush.msra.mxu3 %v588_v8 }
 0x5f0   :  { %614 = vmatpush.msra.mxu3 %v587_v2 }
 0x5f2   :  { %615 = vmatpush.msra.mxu3 %v586_v10 }
 0x5f3   :  { %690 = vmatmul.msk.f32.vlgmr.msra.gmra.mxu3 %vm217_vm4, %v590_v11 }
 0x676   :  { %v617_v13 = vpop.f32.mrf.mxu3 }
 0x677   :  { %v618_v9 = vadd.f32 %v617_v13, %v595_v61 }
 0x679   :  { %v620_v15 = vmul.f32 %v920_v0, %v618_v9 }
 0x67b   :  { %621 = vst [vmem:[#allocation2] sm:$0xff] %v620_v15 }
 0x67c   :  { %632 = dma.vmem_to_hbm [thread:$0]  %s628_s8, 128, %s630_s11, [#allocation3]  }
 0x67d   :  { %757 = dma.done.wait [#allocation3], 128  }
 0x67e   :  { %758 = vsyncadd [#allocation3], 4294967168 }
 0x67f   :  { %637 = vsyncpa [#allocation3], 1 }

</bundles_post_ra>
